<compile_context>
chip_gen: v5e
topology: v5e:2x2
jax: 0.10.0
libtpu: 0.0.40
codegen_flags: <defaults>
</compile_context>

<pallas_src>
import jax
import jax.numpy as jnp
from jax.experimental import pallas as pl
from jax.experimental.pallas import tpu as pltpu


def _round_up(a, b):
    return ((a + b - 1) // b) * b


def _conv_attn_kernel(x_ref,      # (TB, Lp, C)   bf16  padded token/note features
                      lens_ref,   # (TB, 1)       int32 valid lengths
                      wc_ref,     # (C, 3*HP)     bf16  fused conv taps, lane-tile aligned
                      bc_ref,     # (1, HP)       f32   conv bias (zero-padded)
                      wa_ref,     # (HP, HP)      bf16  attention projection (zero-padded)
                      ba_ref,     # (1, HP)       f32   attention bias (zero-padded)
                      ua_ref,     # (1, HP)       f32   attention context (zero-padded)
                      ft_ref,     # (TB, HP)      bf16  out: attended features (lane-dense)
                      attn_ref):  # (TB, Lp)      f32   out: attention weights
    TB, Lp, C = x_ref.shape
    HP = ft_ref.shape[-1]
    M = TB * Lp

    # Lp % 8 == 0 (enforced by wrapper) -> this reshape is layout-preserving.
    x = x_ref[...].reshape(M, C)

    # --- Conv1d(kernel_size=3, padding=1) as ONE fused (M, C) x (C, 3*HP) matmul ---
    # Tap columns are zero-padded to HP (multiple of 128) so the three slices fall
    # on lane-tile boundaries (no lane realignment before the add).
    z = jnp.dot(x, wc_ref[...], preferred_element_type=jnp.float32)   # (M, 3*HP) f32
    z_prev = z[:, 0 * HP:1 * HP]    # tap on x[t]; contributes to position t+1
    z_curr = z[:, 1 * HP:2 * HP]    # tap on x[t]; contributes to position t
    z_next = z[:, 2 * HP:3 * HP]    # tap on x[t]; contributes to position t-1

    # Shift the +/-1 taps with XLU sublane rolls.  pltpu.roll only takes
    # non-negative shifts: shift = M-1 is the cyclic equivalent of -1.
    # Row-boundary positions are masked (== Conv1d padding=1, and no leakage
    # between the TB rows batched inside one block).
    pos = jax.lax.broadcasted_iota(jnp.int32, (M, 1), 0) % Lp
    not_first = (pos != 0).astype(jnp.float32)
    not_last = (pos != (Lp - 1)).astype(jnp.float32)

    h = (pltpu.roll(z_prev, shift=1, axis=0) * not_first
         + z_curr
         + pltpu.roll(z_next, shift=M - 1, axis=0) * not_last
         + bc_ref[...])                                               # (M, HP) f32

    # --- HAN additive attention ---
    u = jnp.tanh(jnp.dot(h.astype(wa_ref.dtype), wa_ref[...],
                         preferred_element_type=jnp.float32) + ba_ref[...])   # (M, HP)

    # score = <u, ctx>: VPU multiply + lane reduction, laid out lane-dense as (TB, Lp)
    scores = jnp.sum(u.reshape(TB, Lp, HP) * ua_ref[...], axis=-1)            # (TB, Lp)

    # length-masked softmax over Lp (lane axis); exact divide so weights sum to 1
    length = lens_ref[...]                                                    # (TB, 1)
    tpos = jax.lax.broadcasted_iota(jnp.int32, (TB, Lp), 1)
    valid = tpos < length                                                     # (TB, Lp)
    s = jnp.where(valid, scores, jnp.float32(-1e30))
    m = jnp.max(s, axis=-1, keepdims=True)
    p = jnp.exp(s - m) * valid.astype(jnp.float32)
    denom = jnp.sum(p, axis=-1, keepdims=True)
    # guard zero-length / padded rows (denom == 0) -> alpha = 0, ft = 0 (no NaN)
    alpha = p / jnp.where(denom > 0.0, denom, 1.0)                            # (TB, Lp)

    attn_ref[...] = alpha

    # Weighted feature sum: VPU broadcast-multiply + sublane reduction over Lp
    # (keeps the epilogue off the MXU -- no q=1 batched matmuls).
    h3 = h.reshape(TB, Lp, HP)
    ft = jnp.sum(alpha[:, :, None] * h3, axis=1)                              # (TB, HP)
    ft_ref[...] = ft.astype(ft_ref.dtype)


def conv_attn(x, lengths, wc, bc, wa, ba, ua, *, target_rows=1024):
    """Conv1d(k=3, pad=1) encoder + length-masked additive attention over padded rows.

    x: (N, L, C) float, lengths: (N,) int.
    Returns ft: (N, H) bf16, attn: (N, L) f32.
    """
    N, L, C = x.shape
    H = wa.shape[0]
    assert wc.shape == (C, 3 * H)

    Lp = _round_up(L, 8)          # sublane-aligned -> in-kernel reshapes are free
    HP = _round_up(H, 128)        # lane-tile-aligned hidden width (lane-dense ft)

    # rows per grid step: ~target_rows flattened (TB*Lp) matmul rows, multiple of 8,
    # capped at ~half the (rounded) batch so the "parallel" axis keeps >= 2 grid
    # steps when there is enough work (v7x megacore).
    tb = max(8, _round_up(pl.cdiv(target_rows, Lp), 8))
    tb = min(tb, max(8, _round_up(pl.cdiv(N, 2), 8)))
    n_pad = _round_up(N, tb)

    # pad batch (padded rows: length 0 -> alpha = 0, ft = 0) and sequence (zeros,
    # which contribute 0 through the conv taps, matching Conv1d's implicit pad).
    x_bf = jnp.pad(x.astype(jnp.bfloat16),
                   ((0, n_pad - N), (0, Lp - L), (0, 0)))
    lens2 = jnp.pad(lengths.astype(jnp.int32), (0, n_pad - N)).reshape(n_pad, 1)

    # zero-pad weights into the HP-wide hidden space (one-time layout plumbing).
    wc_p = jnp.zeros((C, 3 * HP), jnp.float32)
    for k in range(3):
        wc_p = wc_p.at[:, k * HP:k * HP + H].set(wc[:, k * H:(k + 1) * H])
    wa_p = jnp.zeros((HP, HP), jnp.float32).at[:H, :H].set(wa)
    bc_p = jnp.pad(bc.astype(jnp.float32), ((0, 0), (0, HP - H)))
    ba_p = jnp.pad(ba.astype(jnp.float32), ((0, 0), (0, HP - H)))
    ua_p = jnp.pad(ua.astype(jnp.float32), ((0, 0), (0, HP - H)))

    ft, attn = pl.pallas_call(
        _conv_attn_kernel,
        out_shape=(jax.ShapeDtypeStruct((n_pad, HP), jnp.bfloat16),
                   jax.ShapeDtypeStruct((n_pad, Lp), jnp.float32)),
        grid=(n_pad // tb,),
        in_specs=[
            pl.BlockSpec((tb, Lp, C), lambda i: (i, 0, 0)),    # x
            pl.BlockSpec((tb, 1), lambda i: (i, 0)),           # lengths
            pl.BlockSpec((C, 3 * HP), lambda i: (0, 0)),       # fused conv weight
            pl.BlockSpec((1, HP), lambda i: (0, 0)),           # conv bias
            pl.BlockSpec((HP, HP), lambda i: (0, 0)),          # attention weight
            pl.BlockSpec((1, HP), lambda i: (0, 0)),           # attention bias
            pl.BlockSpec((1, HP), lambda i: (0, 0)),           # attention context
        ],
        out_specs=[
            pl.BlockSpec((tb, HP), lambda i: (i, 0)),          # ft  (128-lane dense, bf16)
            pl.BlockSpec((tb, Lp), lambda i: (i, 0)),          # attn (small; kept f32)
        ],
        compiler_params=pltpu.CompilerParams(
            dimension_semantics=("parallel",),                 # independent rows -> megacore
            vmem_limit_bytes=64 * 1024 * 1024),
    )(x_bf, lens2, wc_p.astype(jnp.bfloat16), bc_p,
      wa_p.astype(jnp.bfloat16), ba_p, ua_p)

    return ft[:N, :H], attn[:N, :L]


def order_notes(ft_note, stay_order):
    """Equivalent of reference order_notes: prepend a zero row, gather by stay_order."""
    H = ft_note.shape[-1]
    padded = jnp.concatenate([jnp.zeros((1, H), ft_note.dtype), ft_note], axis=0)
    gathered = padded[stay_order.reshape(-1)]
    return gathered.reshape(stay_order.shape[0], stay_order.shape[1], H)


def make_params(key, c_in, hidden):
    ks = jax.random.split(key, 5)
    # fused Conv1d(k=3) weight: cols [0:H]=tap on x[t-1], [H:2H]=tap on x[t], [2H:3H]=tap on x[t+1]
    wc = jax.random.normal(ks[0], (c_in, 3 * hidden), jnp.float32) * 0.1
    bc = jax.random.normal(ks[1], (1, hidden), jnp.float32) * 0.01
    wa = jax.random.normal(ks[2], (hidden, hidden), jnp.float32) * 0.1
    ba = jax.random.normal(ks[3], (1, hidden), jnp.float32) * 0.01
    ua = jax.random.normal(ks[4], (1, hidden), jnp.float32) * 0.1
    return wc, bc, wa, ba, ua


def token_han_encoder(notes, note_lengths, stay_lengths, stay_order,
                      embed_table, note_params, stay_params):
    """Full TokenHANEncoder forward (inference / pack_seq=False semantics)."""
    # word embedding + word_dropout (identity at inference) -- gather directly in bf16
    notes_emb = embed_table.astype(jnp.bfloat16)[notes]         # (num_notes, L, E) bf16

    # token-level encode + attend  (Pallas hot path)
    ft_note, attn_note = conv_attn(notes_emb, note_lengths, *note_params)

    # arrange note representations into stays (plain-JAX glue, stays in bf16)
    stays = order_notes(ft_note, stay_order)                    # (num_stays, Ls, H)

    # note-level (stay) encode + attend  (Pallas hot path)
    ft_stay, attn_stay = conv_attn(stays, stay_lengths, *stay_params)

    # user-facing features in f32 (weights inside were accumulated in f32 anyway)
    return ft_stay.astype(jnp.float32), (attn_note, attn_stay)


if __name__ == "__main__":
    key = jax.random.PRNGKey(0)
    k_emb, k_tok, k_note, k_stay = jax.random.split(key, 4)

    vocab_size, embed_dim, hidden = 50, 16, 32
    num_notes, padded_note_len = 6, 8
    num_stays, padded_stay_len = 2, 4

    embed_table = jax.random.normal(k_emb, (vocab_size, embed_dim), jnp.float32) * 0.1

    notes = jax.random.randint(k_tok, (num_notes, padded_note_len), 0, vocab_size,
                               dtype=jnp.int32)
    note_lengths = jnp.array([8, 5, 3, 8, 2, 6], dtype=jnp.int32)

    # stay_order indexes 1..num_notes into ft_note (0 == zero-pad row)
    stay_order = jnp.array([[1, 2, 3, 0],
                            [4, 5, 6, 0]], dtype=jnp.int32)
    stay_lengths = jnp.array([3, 3], dtype=jnp.int32)

    note_params = make_params(k_note, embed_dim, hidden)   # Conv1d(E->H) + attention
    stay_params = make_params(k_stay, hidden, hidden)      # Conv1d(H->H) + attention

    ft_stay, (attn_note, attn_stay) = token_han_encoder(
        notes, note_lengths, stay_lengths, stay_order,
        embed_table, note_params, stay_params)

    jax.block_until_ready((ft_stay, attn_note, attn_stay))

    assert ft_stay.shape == (num_stays, hidden)
    assert attn_note.shape == (num_notes, padded_note_len)
    assert attn_stay.shape == (num_stays, padded_stay_len)
    assert bool(jnp.all(jnp.isfinite(ft_stay)))
    assert bool(jnp.all(jnp.isfinite(attn_note)))
    assert bool(jnp.all(jnp.isfinite(attn_stay)))
    print("KERNEL_OK")
</pallas_src>

<mosaic_0001>
module attributes {stable_mosaic.version = 11 : i64} {
  func.func @_conv_attn_kernel(%arg0: i32, %arg1: memref<8x8x16xbf16, #tpu.memory_space<vmem>>, %arg2: memref<8x1xi32, #tpu.memory_space<vmem>>, %arg3: memref<16x384xbf16, #tpu.memory_space<vmem>>, %arg4: memref<1x128xf32, #tpu.memory_space<vmem>>, %arg5: memref<128x128xbf16, #tpu.memory_space<vmem>>, %arg6: memref<1x128xf32, #tpu.memory_space<vmem>>, %arg7: memref<1x128xf32, #tpu.memory_space<vmem>>, %arg8: memref<8x128xbf16, #tpu.memory_space<vmem>>, %arg9: memref<8x8xf32, #tpu.memory_space<vmem>>) attributes {dimension_semantics = [#tpu.dimension_semantics<parallel>], iteration_bounds = array<i64: 1>, scalar_prefetch = 0 : i64, scratch_operands = 0 : i64, tpu.core_type = #tpu.core_type<tc>, window_params = [{transform_indices = @transform_0, window_bounds = array<i64: 8, 8, 16>}, {transform_indices = @transform_1, window_bounds = array<i64: 8, 1>}, {pipeline_mode = #tpu.pipeline_mode<synchronous>, transform_indices = @transform_2, window_bounds = array<i64: 16, 384>}, {pipeline_mode = #tpu.pipeline_mode<synchronous>, transform_indices = @transform_3, window_bounds = array<i64: 1, 128>}, {pipeline_mode = #tpu.pipeline_mode<synchronous>, transform_indices = @transform_4, window_bounds = array<i64: 128, 128>}, {pipeline_mode = #tpu.pipeline_mode<synchronous>, transform_indices = @transform_5, window_bounds = array<i64: 1, 128>}, {pipeline_mode = #tpu.pipeline_mode<synchronous>, transform_indices = @transform_6, window_bounds = array<i64: 1, 128>}, {transform_indices = @transform_7, window_bounds = array<i64: 8, 128>}, {transform_indices = @transform_8, window_bounds = array<i64: 8, 8>}]} {
    %c0 = arith.constant 0 : index
    %c0_0 = arith.constant 0 : index
    %c0_1 = arith.constant 0 : index
    %0 = vector.load %arg1[%c0, %c0_0, %c0_1] : memref<8x8x16xbf16, #tpu.memory_space<vmem>>, vector<8x8x16xbf16>
    %1 = vector.shape_cast %0 : vector<8x8x16xbf16> to vector<64x16xbf16>
    %c0_2 = arith.constant 0 : index
    %c0_3 = arith.constant 0 : index
    %2 = vector.load %arg3[%c0_2, %c0_3] : memref<16x384xbf16, #tpu.memory_space<vmem>>, vector<16x384xbf16>
    %cst = arith.constant dense<0.000000e+00> : vector<64x384xf32>
    %3 = tpu.matmul %1, %2, %cst {dimension_numbers = #tpu.dot_dimension_numbers<[1], [0], [0], [1], [0, 0, 1, 1], [], []>} : vector<64x16xbf16>, vector<16x384xbf16>, vector<64x384xf32> -> vector<64x384xf32>
    %4 = vector.extract_strided_slice %3 {offsets = [0, 0], sizes = [64, 128], strides = [1, 1]} : vector<64x384xf32> to vector<64x128xf32>
    %5 = vector.extract_strided_slice %3 {offsets = [0, 128], sizes = [64, 128], strides = [1, 1]} : vector<64x384xf32> to vector<64x128xf32>
    %6 = vector.extract_strided_slice %3 {offsets = [0, 256], sizes = [64, 128], strides = [1, 1]} : vector<64x384xf32> to vector<64x128xf32>
    %7 = tpu.iota {dimensions = array<i32: 0>} : vector<64x1xi32>
    %c8_i32 = arith.constant 8 : i32
    %c0_i32 = arith.constant 0 : i32
    %8 = arith.cmpi eq, %c8_i32, %c0_i32 : i32
    %c1_i32 = arith.constant 1 : i32
    %9 = arith.select %8, %c1_i32, %c8_i32 : i32
    %10 = vector.broadcast %9 : i32 to vector<64x1xi32>
    %11 = arith.remsi %7, %10 : vector<64x1xi32>
    %c0_i32_4 = arith.constant 0 : i32
    %12 = vector.broadcast %c0_i32_4 : i32 to vector<64x1xi32>
    %13 = arith.cmpi ne, %11, %12 : vector<64x1xi32>
    %c0_i32_5 = arith.constant 0 : i32
    %14 = vector.broadcast %c0_i32_5 : i32 to vector<64x1xi32>
    %15 = arith.cmpi slt, %11, %14 : vector<64x1xi32>
    %c0_i32_6 = arith.constant 0 : i32
    %16 = arith.cmpi slt, %9, %c0_i32_6 : i32
    %17 = vector.broadcast %16 : i1 to vector<64x1xi1>
    %18 = vector.broadcast %17 : vector<64x1xi1> to vector<64x1xi1>
    %19 = arith.xori %15, %18 : vector<64x1xi1>
    %20 = arith.andi %19, %13 : vector<64x1xi1>
    %21 = vector.broadcast %9 : i32 to vector<64x1xi32>
    %22 = arith.addi %11, %21 : vector<64x1xi32>
    %23 = arith.select %20, %22, %11 : vector<64x1xi1>, vector<64x1xi32>
    %c0_i32_7 = arith.constant 0 : i32
    %24 = vector.broadcast %c0_i32_7 : i32 to vector<64x1xi32>
    %25 = arith.cmpi ne, %23, %24 : vector<64x1xi32>
    %26 = arith.extui %25 : vector<64x1xi1> to vector<64x1xi32>
    %27 = arith.sitofp %26 : vector<64x1xi32> to vector<64x1xf32>
    %c7_i32 = arith.constant 7 : i32
    %28 = vector.broadcast %c7_i32 : i32 to vector<64x1xi32>
    %29 = arith.cmpi ne, %23, %28 : vector<64x1xi32>
    %30 = arith.extui %29 : vector<64x1xi1> to vector<64x1xi32>
    %31 = arith.sitofp %30 : vector<64x1xi32> to vector<64x1xf32>
    %c1_i32_8 = arith.constant 1 : i32
    %32 = tpu.dynamic_rotate %4 by %c1_i32_8 dim 0 : vector<64x128xf32>, i32 -> vector<64x128xf32>
    %33 = vector.broadcast %27 : vector<64x1xf32> to vector<64x128xf32>
    %34 = arith.mulf %32, %33 : vector<64x128xf32>
    %35 = arith.addf %34, %5 : vector<64x128xf32>
    %c63_i32 = arith.constant 63 : i32
    %36 = tpu.dynamic_rotate %6 by %c63_i32 dim 0 : vector<64x128xf32>, i32 -> vector<64x128xf32>
    %37 = vector.broadcast %31 : vector<64x1xf32> to vector<64x128xf32>
    %38 = arith.mulf %36, %37 : vector<64x128xf32>
    %39 = arith.addf %35, %38 : vector<64x128xf32>
    %c0_9 = arith.constant 0 : index
    %c0_10 = arith.constant 0 : index
    %40 = vector.load %arg4[%c0_9, %c0_10] : memref<1x128xf32, #tpu.memory_space<vmem>>, vector<1x128xf32>
    %41 = vector.broadcast %40 : vector<1x128xf32> to vector<64x128xf32>
    %42 = arith.addf %39, %41 : vector<64x128xf32>
    %43 = arith.truncf %42 : vector<64x128xf32> to vector<64x128xbf16>
    %c0_11 = arith.constant 0 : index
    %c0_12 = arith.constant 0 : index
    %44 = vector.load %arg5[%c0_11, %c0_12] : memref<128x128xbf16, #tpu.memory_space<vmem>>, vector<128x128xbf16>
    %cst_13 = arith.constant dense<0.000000e+00> : vector<64x128xf32>
    %45 = tpu.matmul %43, %44, %cst_13 {dimension_numbers = #tpu.dot_dimension_numbers<[1], [0], [0], [1], [0, 0, 1, 1], [], []>} : vector<64x128xbf16>, vector<128x128xbf16>, vector<64x128xf32> -> vector<64x128xf32>
    %c0_14 = arith.constant 0 : index
    %c0_15 = arith.constant 0 : index
    %46 = vector.load %arg6[%c0_14, %c0_15] : memref<1x128xf32, #tpu.memory_space<vmem>>, vector<1x128xf32>
    %47 = vector.broadcast %46 : vector<1x128xf32> to vector<64x128xf32>
    %48 = arith.addf %45, %47 : vector<64x128xf32>
    %49 = math.tanh %48 : vector<64x128xf32>
    %50 = vector.shape_cast %49 : vector<64x128xf32> to vector<8x8x128xf32>
    %c0_16 = arith.constant 0 : index
    %c0_17 = arith.constant 0 : index
    %51 = vector.load %arg7[%c0_16, %c0_17] : memref<1x128xf32, #tpu.memory_space<vmem>>, vector<1x128xf32>
    %52 = vector.shape_cast %51 : vector<1x128xf32> to vector<1x1x128xf32>
    %53 = vector.broadcast %52 : vector<1x1x128xf32> to vector<8x8x128xf32>
    %54 = arith.mulf %50, %53 : vector<8x8x128xf32>
    %cst_18 = arith.constant dense<0.000000e+00> : vector<8x8xf32>
    %55 = vector.multi_reduction <add>, %54, %cst_18 [2] : vector<8x8x128xf32> to vector<8x8xf32>
    %c0_19 = arith.constant 0 : index
    %c0_20 = arith.constant 0 : index
    %56 = vector.load %arg2[%c0_19, %c0_20] : memref<8x1xi32, #tpu.memory_space<vmem>>, vector<8x1xi32>
    %57 = tpu.iota {dimensions = array<i32: 1>} : vector<8x8xi32>
    %58 = vector.broadcast %56 : vector<8x1xi32> to vector<8x8xi32>
    %59 = arith.cmpi slt, %57, %58 : vector<8x8xi32>
    %cst_21 = arith.constant -1.000000e+30 : f32
    %60 = vector.broadcast %cst_21 : f32 to vector<8x8xf32>
    %61 = arith.select %59, %55, %60 : vector<8x8xi1>, vector<8x8xf32>
    %cst_22 = arith.constant dense<0xFF800000> : vector<8xf32>
    %62 = vector.multi_reduction <maximumf>, %61, %cst_22 [1] : vector<8x8xf32> to vector<8xf32>
    %63 = vector.shape_cast %62 : vector<8xf32> to vector<8x1xf32>
    %64 = vector.broadcast %63 : vector<8x1xf32> to vector<8x8xf32>
    %65 = arith.subf %61, %64 : vector<8x8xf32>
    %66 = math.exp %65 : vector<8x8xf32>
    %67 = arith.extui %59 : vector<8x8xi1> to vector<8x8xi32>
    %68 = arith.sitofp %67 : vector<8x8xi32> to vector<8x8xf32>
    %69 = arith.mulf %66, %68 : vector<8x8xf32>
    %cst_23 = arith.constant dense<0.000000e+00> : vector<8xf32>
    %70 = vector.multi_reduction <add>, %69, %cst_23 [1] : vector<8x8xf32> to vector<8xf32>
    %71 = vector.shape_cast %70 : vector<8xf32> to vector<8x1xf32>
    %cst_24 = arith.constant 0.000000e+00 : f32
    %72 = vector.broadcast %cst_24 : f32 to vector<8x1xf32>
    %73 = arith.cmpf ogt, %71, %72 : vector<8x1xf32>
    %cst_25 = arith.constant 1.000000e+00 : f32
    %74 = vector.broadcast %cst_25 : f32 to vector<8x1xf32>
    %75 = arith.select %73, %71, %74 : vector<8x1xi1>, vector<8x1xf32>
    %76 = vector.broadcast %75 : vector<8x1xf32> to vector<8x8xf32>
    %77 = arith.divf %69, %76 : vector<8x8xf32>
    %c0_26 = arith.constant 0 : index
    %c0_27 = arith.constant 0 : index
    %78 = vector.load %arg9[%c0_26, %c0_27] : memref<8x8xf32, #tpu.memory_space<vmem>>, vector<8x8xf32>
    tpu.vector_store %arg9[%c0_26, %c0_27], %77 {strides = array<i32>} : memref<8x8xf32, #tpu.memory_space<vmem>>, vector<8x8xf32>,
    %79 = vector.shape_cast %42 : vector<64x128xf32> to vector<8x8x128xf32>
    %80 = vector.shape_cast %77 : vector<8x8xf32> to vector<8x8x1xf32>
    %81 = vector.broadcast %80 : vector<8x8x1xf32> to vector<8x8x128xf32>
    %82 = arith.mulf %81, %79 : vector<8x8x128xf32>
    %cst_28 = arith.constant dense<0.000000e+00> : vector<8x128xf32>
    %83 = vector.multi_reduction <add>, %82, %cst_28 [1] : vector<8x8x128xf32> to vector<8x128xf32>
    %84 = arith.truncf %83 : vector<8x128xf32> to vector<8x128xbf16>
    %c0_29 = arith.constant 0 : index
    %c0_30 = arith.constant 0 : index
    %85 = vector.load %arg8[%c0_29, %c0_30] : memref<8x128xbf16, #tpu.memory_space<vmem>>, vector<8x128xbf16>
    tpu.vector_store %arg8[%c0_29, %c0_30], %84 {strides = array<i32>} : memref<8x128xbf16, #tpu.memory_space<vmem>>, vector<8x128xbf16>,
    return
  }
  func.func @transform_0(%arg0: i32) -> (i32, i32, i32) {
    %c0_i32 = arith.constant 0 : i32
    %c0_i32_0 = arith.constant 0 : i32
    %c0_i32_1 = arith.constant 0 : i32
    return %arg0, %c0_i32, %c0_i32_0 : i32, i32, i32
  }
  func.func @transform_1(%arg0: i32) -> (i32, i32) {
    %c0_i32 = arith.constant 0 : i32
    %c0_i32_0 = arith.constant 0 : i32
    return %arg0, %c0_i32 : i32, i32
  }
  func.func @transform_2(%arg0: i32) -> (i32, i32) {
    %c0_i32 = arith.constant 0 : i32
    %c0_i32_0 = arith.constant 0 : i32
    %c0_i32_1 = arith.constant 0 : i32
    return %c0_i32, %c0_i32_0 : i32, i32
  }
  func.func @transform_3(%arg0: i32) -> (i32, i32) {
    %c0_i32 = arith.constant 0 : i32
    %c0_i32_0 = arith.constant 0 : i32
    %c0_i32_1 = arith.constant 0 : i32
    return %c0_i32, %c0_i32_0 : i32, i32
  }
  func.func @transform_4(%arg0: i32) -> (i32, i32) {
    %c0_i32 = arith.constant 0 : i32
    %c0_i32_0 = arith.constant 0 : i32
    %c0_i32_1 = arith.constant 0 : i32
    return %c0_i32, %c0_i32_0 : i32, i32
  }
  func.func @transform_5(%arg0: i32) -> (i32, i32) {
    %c0_i32 = arith.constant 0 : i32
    %c0_i32_0 = arith.constant 0 : i32
    %c0_i32_1 = arith.constant 0 : i32
    return %c0_i32, %c0_i32_0 : i32, i32
  }
  func.func @transform_6(%arg0: i32) -> (i32, i32) {
    %c0_i32 = arith.constant 0 : i32
    %c0_i32_0 = arith.constant 0 : i32
    %c0_i32_1 = arith.constant 0 : i32
    return %c0_i32, %c0_i32_0 : i32, i32
  }
  func.func @transform_7(%arg0: i32) -> (i32, i32) {
    %c0_i32 = arith.constant 0 : i32
    %c0_i32_0 = arith.constant 0 : i32
    return %arg0, %c0_i32 : i32, i32
  }
  func.func @transform_8(%arg0: i32) -> (i32, i32) {
    %c0_i32 = arith.constant 0 : i32
    %c0_i32_0 = arith.constant 0 : i32
    return %arg0, %c0_i32 : i32, i32
  }
}

</mosaic_0001>

<bundles_post_ra>
// kernel: tpu_custom_call.1
= control target key start
LH: loop header
LB: loop body
LE: loop exit
PB: predicated region body
PF: predicated region fallthrough
CT: control target
= control target key end

     0   :  { %14 = vsyncpa [#allocation3], 0  ;;  %s1379_s0 = inlined_call_operand.hbm [shape: bf16[8,8,16], index: 0, kind: input, shape index: {}]   ;;  %s1380_s1 = inlined_call_operand.vmem [shape: s32[8,1], index: 1, kind: input, shape index: {}]   ;;  %s1381_s2 = inlined_call_operand.hbm [shape: bf16[16,384], index: 2, kind: input, shape index: {}]   ;;  %s1382_s3 = inlined_call_operand.vmem [shape: f32[1,128], index: 3, kind: input, shape index: {}]   ;;  %s1383_s4 = inlined_call_operand.hbm [shape: bf16[128,128], index: 4, kind: input, shape index: {}]   ;;  %s1384_s5 = inlined_call_operand.vmem [shape: f32[1,128], index: 5, kind: input, shape index: {}]   ;;  %s1385_s6 = inlined_call_operand.vmem [shape: f32[1,128], index: 6, kind: input, shape index: {}]   ;;  %s1386_s7 = inlined_call_operand.hbm [shape: bf16[8,128], index: 7, kind: output, shape index: {0}]   ;;  %s1387_s8 = inlined_call_operand.hbm [shape: f32[8,8], index: 8, kind: output, shape index: {1}]  }
   0x1   :  { %15 = vsyncpa [#allocation6], 0 }
   0x2   :  { %16 = vsyncpa [#allocation4], 0  ;;  %s37_s29 = sshll.u32 %s1381_s2, 4  ;;  %s38_s29 = int_to_ptr.hbm [resolvable:$true] %s37_s29 }
   0x3   :  { %17 = vsyncpa [#allocation10], 0  ;;  %s1122_s30 = smov [#allocation5]   ;;  %s22_s12 = sshll.u32 %s1379_s0, 4  ;;  %s23_s12 = int_to_ptr.hbm [resolvable:$true] %s22_s12 }
   0x4   :  { %s39_s9 = sshll.u32 %s1122_s30, 4  ;;  %s1123_s13 = smov 192   ;;  %s40_s9 = int_to_ptr.vmem [resolvable:$true] %s39_s9 }
   0x5   :  { %s1124_s14 = smov 12   ;;  %s1125_s15 = smov [#allocation2]  }
   0x6   :  { %45 = dma.hbm_to_vmem [thread:$0]  %s38_s29, 384, %s40_s9, [#allocation6], %s1123_s13, %s1123_s13, %s1124_s14  }
   0x7   :  { %s24_s16 = sshll.u32 %s1125_s15, 4  ;;  %s1126_s17 = smov 64   ;;  %s25_s16 = int_to_ptr.vmem [resolvable:$true] %s24_s16 }
   0x8   :  { %s1127_s18 = smov 4   ;;  %s52_s20 = sshll.u32 %s1383_s4, 4  ;;  %s53_s20 = int_to_ptr.hbm [resolvable:$true] %s52_s20 }
   0x9   :  { %30 = dma.hbm_to_vmem [thread:$0]  %s23_s12, 512, %s25_s16, [#allocation3], %s1126_s17, %s1126_s17, %s1127_s18  }
   0xa   :  { %s1128_s21 = smov [#allocation7]  }
   0xb   :  { %s54_s22 = sshll.u32 %s1128_s21, 4  ;;  %s55_s22 = int_to_ptr.vmem [resolvable:$true] %s54_s22 }
   0xc   :  { %60 = dma.hbm_to_vmem [thread:$0]  %s53_s20, 1024, %s55_s22, [#allocation6], %s1126_s17, %s1126_s17, %s1127_s18  }
   0xd   :  { %1114 = dma.done.wait [#allocation3], 512  }
   0xe   :  { %1115 = vsyncadd [#allocation3], 4294966784 }
   0xf   :  { %1116 = dma.done.wait [#allocation6], 1408  }
  0x10   :  { %1117 = vsyncadd [#allocation6], 4294965888  ;;  %v862_v0 = vld [vmem:[#allocation5] sm:$0xf]  ;;  %v938_v1 = vld [vmem:[#allocation5 + $0x8] sm:$0xf0]  ;;  %v226_v13 = vlaneseq }
  0x11   :  { %v870_v2 = vld [vmem:[#allocation5 + $0x8] sm:$0xf]  ;;  %v863_v3 = vor.u32 %v938_v1, %v862_v0  ;;  %v939_v4 = vld [vmem:[#allocation5 + $0x10] sm:$0xf0]  ;;  %v937_v5 = vld [vmem:[#allocation5 + $0x4] sm:$0xf] }
  0x12   :  { %v871_v6 = vor.u32 %v939_v4, %v870_v2  ;;  %v933_v7 = vld [vmem:[#allocation2] sm:$0xff]  ;;  %vm126_vm0 = vcmask 130048   ;;  %v864_v8 = vld [vmem:[#allocation5 + $0xc] sm:$0xf0]  ;;  %v934_v10 = vld [vmem:[#allocation2 + $0x8] sm:$0xff]  ;;  %v1200_v14 = vshrl.u32 %v226_v13, 7 }
  0x13   :  { %146 = vmatpush.bf16.msra.mxu0 %v863_v3  ;;  %v867_v9 = vor.u32 %v937_v5, %v864_v8  ;;  %v935_v11 = vld [vmem:[#allocation2 + $0x10] sm:$0xff]  ;;  %v936_v12 = vld [vmem:[#allocation2 + $0x18] sm:$0xff]  ;;  %v946_v16 = vld [vmem:[#allocation7 + $0x30] sm:$0xff]  ;;  %v1129_v44 = vmov 0.0   ;;  %s828_s29 = sshll.u32 %s1387_s8, 4  ;;  %s1132_s8 = smov [#allocation8]   ;;  %s829_s29 = int_to_ptr.hbm [resolvable:$true] %s828_s29 }
  0x14   :  { %204 = vmatpush.bf16.msra.mxu2 %v871_v6  ;;  %969 = vset.pattern.permute.xlu1 %v1200_v14  ;;  %v947_v15 = vld [vmem:[#allocation7 + $0x38] sm:$0xff]  ;;  %v945_v17 = vld [vmem:[#allocation7 + $0x28] sm:$0xff]  ;;  %v944_v18 = vld [vmem:[#allocation7 + $0x20] sm:$0xff]  ;;  %v229_v31 = vadd.s32 16, %v1200_v14  ;;  %v230_v34 = vadd.s32 24, %v1200_v14  ;;  %vm387_vm2 = vcmp.lt.s32.totalorder %v1200_v14, 1 }
  0x15   :  { %175 = vmatpush.bf16.msra.mxu1 %v867_v9  ;;  %968 = vset.pattern.permute.xlu0 %v1200_v14  ;;  %v943_v21 = vld [vmem:[#allocation7 + $0x18] sm:$0xff]  ;;  %v942_v22 = vld [vmem:[#allocation7 + $0x10] sm:$0xff]  ;;  %v941_v26 = vld [vmem:[#allocation7 + $0x8] sm:$0xff]  ;;  %vm420_vm5 = vcmp.lt.s32.totalorder %v1200_v14, 7  ;;  %v228_v53 = vadd.s32 8, %v1200_v14  ;;  %v231_v57 = vadd.s32 32, %v1200_v14 }
  0x16   :  { %872 = vmatmul.msk.bf16.vlgmr.msra.gmra.mxu0 %vm126_vm0, %v933_v7  ;;  %948 = vmatpush.bf16.msra.mxu3 %v947_v15  ;;  %v940_v27 = vld [vmem:[#allocation7] sm:$0xff]  ;;  %v253_v35 = vand.u32 7, %v229_v31  ;;  %v260_v37 = vand.u32 7, %v230_v34  ;;  %v232_v62 = vadd.s32 40, %v1200_v14  ;;  %v1249_v8 = vld [vmem:[%s1382_s3] ss:$0 sm:$0xff] }
  0x17   :  { %880 = vmatmul.msk.bf16.vlgmr.msra.gmra.mxu2 %vm126_vm0, %v933_v7  ;;  %529 = vmatpush.bf16.msrb.mxu0 %v947_v15  ;;  %v246_v0 = vand.u32 7, %v228_v53  ;;  %v267_v3 = vand.u32 7, %v231_v57  ;;  %v239_v9 = vand.u32 7, %v1200_v14  ;;  %s815_s30 = sshll.u32 %s1132_s8, 4  ;;  %s817_s11 = sshll.u32 %s1386_s7, 4  ;;  %s816_s30 = int_to_ptr.vmem [resolvable:$true] %s815_s30  ;;  %s818_s11 = int_to_ptr.hbm [resolvable:$true] %s817_s11 }
  0x18   :  { %876 = vmatmul.msk.bf16.vlgmr.msra.gmra.mxu1 %vm126_vm0, %v933_v7  ;;  %vm333_vm1 = vcmp.ne.s32.totalorder %v253_v35, 0  ;;  %vm334_vm3 = vcmp.ne.s32.totalorder %v260_v37, 0  ;;  %vm357_vm4 = vcmp.ne.s32.totalorder %v253_v35, 7  ;;  %vm358_vm6 = vcmp.ne.s32.totalorder %v260_v37, 7 }
  0x19   :  { %v886_v45 = vsel %vm333_vm1, 1.0, %v1129_v44  ;;  %v887_v48 = vsel %vm334_vm3, 1.0, %v1129_v44  ;;  %v894_v50 = vsel %vm357_vm4, 1.0, %v1129_v44  ;;  %v895_v59 = vsel %vm358_vm6, 1.0, %v1129_v44 }
  0x1a   :  { %949 = vmatpush.bf16.msra.mxu3 %v946_v16  ;;  %v274_v6 = vand.u32 7, %v232_v62  ;;  %vm332_vm7 = vcmp.ne.s32.totalorder %v246_v0, 0  ;;  %vm335_vm8 = vcmp.ne.s32.totalorder %v267_v3, 0  ;;  %vm359_vm10 = vcmp.ne.s32.totalorder %v267_v3, 7 }
  0x1b   :  { %530 = vmatpush.bf16.msrb.mxu0 %v946_v16  ;;  %vm356_vm11 = vcmp.ne.s32.totalorder %v246_v0, 7  ;;  %vm355_vm12 = vcmp.ne.s32.totalorder %v239_v9, 7  ;;  %v896_v34 = vsel %vm359_vm10, 1.0, %v1129_v44  ;;  %vm331_vm14 = vcmp.ne.s32.totalorder %v239_v9, 0 }
  0x1c   :  { %vm336_vm9 = vcmp.ne.s32.totalorder %v274_v6, 0  ;;  %v893_v37 = vsel %vm356_vm11, 1.0, %v1129_v44  ;;  %vm360_vm13 = vcmp.ne.s32.totalorder %v274_v6, 7  ;;  %vm619_vm4 = vcmask 1042434  }
  0x1d   :  { %vm623_vm6 = vcmask 1044484   ;;  %vm633_vm11 = vcmask 64512  }
  0x1e   :  { %950 = vmatpush.bf16.msra.mxu3 %v945_v17 }
  0x1f   :  { %531 = vmatpush.bf16.msrb.mxu0 %v945_v17 }
  0x22   :  { %951 = vmatpush.bf16.msra.mxu3 %v944_v18 }
  0x23   :  { %532 = vmatpush.bf16.msrb.mxu0 %v944_v18 }
  0x26   :  { %873 = vmatmul.msk.bf16.gmra.mxu0 %vm126_vm0, %v934_v10  ;;  %952 = vmatpush.bf16.msra.mxu3 %v943_v21 }
  0x27   :  { %881 = vmatmul.msk.bf16.gmra.mxu2 %vm126_vm0, %v934_v10  ;;  %533 = vmatpush.bf16.msrb.mxu0 %v943_v21 }
  0x28   :  { %877 = vmatmul.msk.bf16.gmra.mxu1 %vm126_vm0, %v934_v10 }
  0x2a   :  { %953 = vmatpush.bf16.msra.mxu3 %v942_v22 }
  0x2b   :  { %534 = vmatpush.bf16.msrb.mxu0 %v942_v22 }
  0x2e   :  { %954 = vmatpush.bf16.msra.mxu3 %v941_v26 }
  0x2f   :  { %535 = vmatpush.bf16.msrb.mxu0 %v941_v26  ;;  %v888_v26 = vsel %vm335_vm8, 1.0, %v1129_v44  ;;  %vm627_vm8 = vcmask 1046534  }
  0x32   :  { %955 = vmatpush.bf16.msra.mxu3 %v940_v27 }
  0x33   :  { %536 = vmatpush.bf16.msrb.mxu0 %v940_v27 }
  0x36   :  { %874 = vmatmul.msk.bf16.gmra.mxu0 %vm126_vm0, %v935_v11 }
  0x37   :  { %882 = vmatmul.msk.bf16.gmra.mxu2 %vm126_vm0, %v935_v11 }
  0x38   :  { %878 = vmatmul.msk.bf16.gmra.mxu1 %vm126_vm0, %v935_v11 }
  0x46   :  { %875 = vmatmul.msk.bf16.gmra.mxu0 %vm126_vm0, %v936_v12 }
  0x47   :  { %883 = vmatmul.msk.bf16.gmra.mxu2 %vm126_vm0, %v936_v12 }
  0x48   :  { %879 = vmatmul.msk.bf16.gmra.mxu1 %vm126_vm0, %v936_v12 }
  0x93   :  { %v1204_v19 = vpop.f32.mrf.mxu0 }
  0x94   :  { %v379_v11 = vrot.slane %v1204_v19, 7 }
  0x95   :  { %v1206_v20 = vpop.f32.mrf.mxu1 }
  0x9a   :  { %v1208_v23 = vpop.f32.mrf.mxu2 }
  0x9b   :  { %v1210_v24 = vpop.f32.mrf.mxu0 }
  0x9c   :  { %v380_v40 = vrot.slane %v1210_v24, 7  ;;  %v885_v24 = vsel %vm332_vm7, 1.0, %v1129_v44  ;;  %vm625_vm7 = vcmask 1045509  }
  0x9d   :  { %v1212_v25 = vpop.f32.mrf.mxu1 }
  0xa2   :  { %v1214_v28 = vpop.f32.mrf.mxu2 }
  0xa3   :  { %v153_v29 = vpop.f32.mrf.mxu0  ;;  %v413_v31 = vrot.slane %v1214_v28, 1 }
  0xa4   :  { %v381_v38 = vrot.slane %v153_v29, 7  ;;  %v233_v29 = vadd.s32 48, %v1200_v14 }
  0xa5   :  { %v182_v30 = vpop.f32.mrf.mxu1 }
  0xa6   :  { %v393_v46 = vsel %vm387_vm2, %v380_v40, %v381_v38 }
  0xa7   :  { %v398_v52 = vmul.f32 %v886_v45, %v393_v46  ;;  %v412_v46 = vrot.slane %v1208_v23, 1 }
  0xa9   :  { %v406_v63 = vadd.f32 %v398_v52, %v182_v30  ;;  %v394_v30 = vsel %vm387_vm2, %v379_v11, %v380_v40  ;;  %v281_v40 = vand.u32 7, %v233_v29  ;;  %v427_v57 = vsel %vm420_vm5, %v412_v46, %v413_v31 }
  0xaa   :  { %v1217_v32 = vpop.f32.mrf.mxu2  ;;  %v397_v28 = vmul.f32 %v885_v24, %v394_v30 }
  0xab   :  { %v1219_v33 = vpop.f32.mrf.mxu0  ;;  %v414_v47 = vrot.slane %v1217_v32, 1  ;;  %v889_v32 = vsel %vm336_vm9, 1.0, %v1129_v44  ;;  %vm337_vm15 = vcmp.ne.s32.totalorder %v281_v40, 0  ;;  %vm361_vm1 = vcmp.ne.s32.totalorder %v281_v40, 7 }
  0xac   :  { %v382_v41 = vrot.slane %v1219_v33, 7  ;;  %v890_v3 = vsel %vm337_vm15, 1.0, %v1129_v44  ;;  %vm629_vm9 = vcmask 1047559  }
  0xad   :  { %v184_v36 = vpop.f32.mrf.mxu1 }
  0xae   :  { %v392_v49 = vsel %vm387_vm2, %v381_v38, %v382_v41 }
  0xaf   :  { %v399_v55 = vmul.f32 %v887_v48, %v392_v49  ;;  %v897_v48 = vsel %vm360_vm13, 1.0, %v1129_v44 }
  0xb1   :  { %v407_v2 = vadd.f32 %v399_v55, %v184_v36  ;;  %v234_v36 = vadd.s32 56, %v1200_v14  ;;  %v884_v55 = vsel %vm331_vm14, 1.0, %v1129_v44 }
  0xb2   :  { %v213_v39 = vpop.f32.mrf.mxu2 }
  0xb3   :  { %v415_v42 = vrot.slane %v213_v39, 1  ;;  %v158_v43 = vpop.f32.mrf.mxu0  ;;  %v426_v39 = vsel %vm420_vm5, %v413_v31, %v414_v47 }
  0xb4   :  { %v383_v10 = vrot.slane %v158_v43, 7  ;;  %v430_v52 = vmul.f32 %v893_v37, %v426_v39  ;;  %v972_v39 = vld [vmem:[%s1384_s5] ss:$0 sm:$0xff] }
  0xb5   :  { %v425_v51 = vsel %vm420_vm5, %v414_v47, %v415_v42  ;;  %v1237_v54 = vpop.f32.mrf.mxu1 }
  0xb6   :  { %v431_v56 = vmul.f32 %v894_v50, %v425_v51  ;;  %v391_v27 = vsel %vm387_vm2, %v382_v41, %v383_v10  ;;  %v892_v41 = vsel %vm355_vm12, 1.0, %v1129_v44  ;;  %v288_v51 = vand.u32 7, %v234_v36 }
  0xb7   :  { %v400_v38 = vmul.f32 %v888_v26, %v391_v27 }
  0xb8   :  { %v439_v5 = vadd.f32 %v431_v56, %v406_v63  ;;  %v405_v56 = vadd.f32 %v397_v28, %v1212_v25  ;;  %vm338_vm0 = vcmp.ne.s32.totalorder %v288_v51, 0  ;;  %vm362_vm3 = vcmp.ne.s32.totalorder %v288_v51, 7 }
  0xb9   :  { %v408_v53 = vadd.f32 %v400_v38, %v1237_v54  ;;  %v899_v24 = vsel %vm362_vm3, 1.0, %v1129_v44 }
  0xba   :  { %v216_v58 = vpop.f32.mrf.mxu2  ;;  %v1254_v15 = vadd.f32 %v1249_v8, %v439_v5  ;;  %v438_v25 = vadd.f32 %v430_v52, %v405_v56  ;;  %v891_v5 = vsel %vm338_vm0, 1.0, %v1129_v44 }
  0xbb   :  { %v416_v60 = vrot.slane %v216_v58, 1  ;;  %v1241_v61 = vpop.f32.mrf.mxu0 }
  0xbc   :  { %v384_v17 = vrot.slane %v1241_v61, 7 }
  0xbd   :  { %v424_v1 = vsel %vm420_vm5, %v415_v42, %v416_v60  ;;  %v189_v18 = vpop.f32.mrf.mxu1 }
  0xbe   :  { %v432_v4 = vmul.f32 %v895_v59, %v424_v1  ;;  %v390_v33 = vsel %vm387_vm2, %v383_v10, %v384_v17 }
  0xbf   :  { %v401_v42 = vmul.f32 %v889_v32, %v390_v33 }
  0xc0   :  { %v440_v7 = vadd.f32 %v432_v4, %v407_v2  ;;  %v429_v2 = vmul.f32 %v892_v41, %v427_v57 }
  0xc1   :  { %v409_v59 = vadd.f32 %v401_v42, %v189_v18  ;;  %v898_v18 = vsel %vm361_vm1, 1.0, %v1129_v44  ;;  %v973_v42 = vld [vmem:[%s1385_s6] ss:$0 sm:$0xff] }
  0xc2   :  { %v218_v12 = vpop.f32.mrf.mxu2  ;;  %v1257_v16 = vadd.f32 %v1249_v8, %v440_v7 }
  0xc3   :  { %v417_v21 = vrot.slane %v218_v12, 1  ;;  %v1260_v22 = vpop.f32.mrf.mxu0 }
  0xc4   :  { %v458_v19 = vpack.c.bf16 %v1257_v16, %v1254_v15  ;;  %v385_v54 = vrot.slane %v1260_v22, 7  ;;  %v1316_v22 = vadd.f32 %v1249_v8, %v438_v25 }
  0xc5   :  { %v423_v35 = vsel %vm420_vm5, %v416_v60, %v417_v21  ;;  %v192_v58 = vpop.f32.mrf.mxu1 }
  0xc6   :  { %542 = vmatmul.bf16.vlgmr.msra.gmra.mxu3 %v458_v19  ;;  %v433_v43 = vmul.f32 %v896_v34, %v423_v35  ;;  %v389_v10 = vsel %vm387_vm2, %v384_v17, %v385_v54 }
  0xc7   :  { %v402_v26 = vmul.f32 %v890_v3, %v389_v10 }
  0xc8   :  { %v441_v63 = vadd.f32 %v433_v43, %v408_v53 }
  0xc9   :  { %v410_v33 = vadd.f32 %v402_v26, %v192_v58 }
  0xca   :  { %v221_v45 = vpop.f32.mrf.mxu2  ;;  %v1301_v7 = vadd.f32 %v1249_v8, %v441_v63 }
  0xcb   :  { %v418_v49 = vrot.slane %v221_v45, 1  ;;  %v165_v50 = vpop.f32.mrf.mxu0 }
  0xcc   :  { %v386_v47 = vrot.slane %v165_v50, 7 }
  0xcd   :  { %v422_v23 = vsel %vm420_vm5, %v417_v21, %v418_v49  ;;  %v194_v29 = vpop.f32.mrf.mxu1 }
  0xce   :  { %v434_v60 = vmul.f32 %v897_v48, %v422_v23  ;;  %v395_v62 = vsel %vm387_vm2, %v386_v47, %v379_v11  ;;  %v388_v11 = vsel %vm387_vm2, %v385_v54, %v386_v47  ;;  %v1130_v47 = vmov 0  }
  0xcf   :  { %v396_v0 = vmul.f32 %v884_v55, %v395_v62  ;;  %v403_v27 = vmul.f32 %v891_v5, %v388_v11  ;;  %967 = vset.pattern.permute.xlu2 %v1130_v47  ;;  %vm617_vm2 = vcmask 1041409  }
  0xd0   :  { %v442_v1 = vadd.f32 %v434_v60, %v409_v59 }
  0xd1   :  { %v404_v4 = vadd.f32 %v396_v0, %v1206_v20  ;;  %v411_v34 = vadd.f32 %v403_v27, %v194_v29 }
  0xd2   :  { %v223_v6 = vpop.f32.mrf.mxu2  ;;  %v1304_v9 = vadd.f32 %v1249_v8, %v442_v1 }
  0xd3   :  { %v419_v20 = vrot.slane %v223_v6, 1  ;;  %v437_v12 = vadd.f32 %v429_v2, %v404_v4 }
  0xd4   :  { %v459_v21 = vpack.c.bf16 %v1304_v9, %v1301_v7 }
  0xd5   :  { %v421_v61 = vsel %vm420_vm5, %v418_v49, %v419_v20  ;;  %v428_v17 = vsel %vm420_vm5, %v419_v20, %v412_v46  ;;  %v1324_v19 = vadd.f32 %v1249_v8, %v437_v12  ;;  %v594_v20 = vld [vmem:[%s1380_s1] sm:$0xff]  ;;  %vm621_vm5 = vcmask 1043459   ;;  %s1131_s1 = smov [#allocation9]  }
  0xd6   :  { %547 = vmatmul.bf16.gmra.mxu3 %v459_v21  ;;  %v435_v31 = vmul.f32 %v898_v18, %v421_v61  ;;  %v436_v32 = vmul.f32 %v899_v24, %v428_v17  ;;  %v596_v61 = vand.u32 127, %v226_v13  ;;  %s826_s26 = sshll.u32 %s1131_s1, 4  ;;  %s827_s26 = int_to_ptr.vmem [resolvable:$true] %s826_s26 }
  0xd7   :  { %v457_v30 = vpack.c.bf16 %v1316_v22, %v1324_v19 }
  0xd8   :  { %v443_v35 = vadd.f32 %v435_v31, %v410_v33  ;;  %v444_v36 = vadd.f32 %v436_v32, %v411_v34 }
  0xd9   :  { %537 = vmatmul.bf16.vlgmr.msrb.gmra.mxu0 %v457_v30 }
  0xda   :  { %v1329_v37 = vadd.f32 %v1249_v8, %v443_v35  ;;  %v1332_v38 = vadd.f32 %v1249_v8, %v444_v36 }
  0xdc   :  { %v460_v28 = vpack.c.bf16 %v1332_v38, %v1329_v37 }
  0xe6   :  { %552 = vmatmul.bf16.gmra.mxu3 %v460_v28 }
 0x149   :  { %v543_v40 = vpop.f32.mrf.mxu3 }
 0x14a   :  { %v544_v41 = vadd.f32 %v972_v39, %v543_v40 }
 0x14c   :  { %974 = vtanh.f32 %v544_v41 }
 0x151   :  { %v545_v43 = vpop.f32.mrf.mxu3 }
 0x152   :  { %v975_v45 = vpop.eup %974  ;;  %v546_v46 = vadd.f32 %v972_v39, %v545_v43 }
 0x153   :  { %v572_v8 = vmul.f32 %v975_v45, %v973_v42 }
 0x154   :  { %976 = vtanh.f32 %v546_v46 }
 0x155   :  { %582 = vadd.xlane.f32.xlu1 %v572_v8 }
 0x156   :  { %v538_v48 = vpop.f32.mrf.mxu0 }
 0x157   :  { %v539_v49 = vadd.f32 %v972_v39, %v538_v48 }
 0x159   :  { %978 = vtanh.f32 %v539_v49  ;;  %v548_v50 = vpop.f32.mrf.mxu3 }
 0x15a   :  { %v977_v51 = vpop.eup %976  ;;  %v549_v52 = vadd.f32 %v972_v39, %v548_v50 }
 0x15b   :  { %v573_v53 = vmul.f32 %v977_v51, %v973_v42 }
 0x15c   :  { %980 = vtanh.f32 %v549_v52 }
 0x15d   :  { %584 = vadd.xlane.f32.xlu1 %v573_v53 }
 0x15e   :  { %v540_v55 = vpop.f32.mrf.mxu0 }
 0x15f   :  { %v979_v56 = vpop.eup %978  ;;  %v541_v57 = vadd.f32 %v972_v39, %v540_v55 }
 0x160   :  { %v570_v58 = vmul.f32 %v979_v56, %v973_v42 }
 0x161   :  { %982 = vtanh.f32 %v541_v57  ;;  %v550_v23 = vpop.f32.mrf.mxu3 }
 0x162   :  { %v981_v59 = vpop.eup %980  ;;  %v551_v60 = vadd.f32 %v972_v39, %v550_v23  ;;  %578 = vadd.xlane.f32.xlu0 %v570_v58 }
 0x163   :  { %v574_v62 = vmul.f32 %v981_v59, %v973_v42 }
 0x164   :  { %984 = vtanh.f32 %v551_v60 }
 0x165   :  { %586 = vadd.xlane.f32.xlu2 %v574_v62 }
 0x167   :  { %v983_v63 = vpop.eup %982 }
 0x168   :  { %v571_v54 = vmul.f32 %v983_v63, %v973_v42 }
 0x169   :  { %v553_v0 = vpop.f32.mrf.mxu3 }
 0x16a   :  { %v985_v1 = vpop.eup %984  ;;  %v554_v25 = vadd.f32 %v972_v39, %v553_v0  ;;  %580 = vadd.xlane.f32.xlu0 %v571_v54 }
 0x16b   :  { %v575_v2 = vmul.f32 %v985_v1, %v973_v42 }
 0x16c   :  { %986 = vtanh.f32 %v554_v25 }
 0x16d   :  { %588 = vadd.xlane.f32.xlu2 %v575_v2 }
 0x171   :  { %v555_v3 = vpop.f32.mrf.mxu3 }
 0x172   :  { %v987_v4 = vpop.eup %986  ;;  %v556_v5 = vadd.f32 %v972_v39, %v555_v3 }
 0x173   :  { %v576_v6 = vmul.f32 %v987_v4, %v973_v42 }
 0x174   :  { %988 = vtanh.f32 %v556_v5 }
 0x175   :  { %590 = vadd.xlane.f32.xlu0 %v576_v6 }
 0x17a   :  { %v989_v10 = vpop.eup %988 }
 0x17b   :  { %v577_v11 = vmul.f32 %v989_v10, %v973_v42 }
 0x17d   :  { %592 = vadd.xlane.f32.xlu1 %v577_v11 }
 0x185   :  { %598 = vperm.xlu2 %967, %v594_v20  }
 0x18d   :  { %970 = vset.pattern.permute.xlu2 %v1200_v14 }
 0x1c8   :  { %v583_v18 = vpop.xlane.xlu1 %582 }
 0x1c9   :  { %v611_v29 = vperm.slane %v583_v18, %v596_v61 }
 0x1d0   :  { %v585_v30 = vpop.xlane.xlu1 %584 }
 0x1d1   :  { %v612_v33 = vperm.slane %v585_v30, %v596_v61 }
 0x1d5   :  { %v579_v12 = vpop.xlane.xlu0 %578 }
 0x1d6   :  { %v609_v26 = vperm.slane %v579_v12, %v596_v61 }
 0x1d8   :  { %v587_v21 = vpop.xlane.xlu2 %586 }
 0x1d9   :  { %v613_v35 = vperm.slane %v587_v21, %v596_v61 }
 0x1dd   :  { %v581_v24 = vpop.xlane.xlu0 %580 }
 0x1de   :  { %v610_v17 = vperm.slane %v581_v24, %v596_v61 }
 0x1e0   :  { %v618_v27 = vsel %vm617_vm2, %v610_v17, %v609_v26  ;;  %v589_v31 = vpop.xlane.xlu2 %588 }
 0x1e1   :  { %v620_v32 = vsel %vm619_vm4, %v611_v29, %v618_v27  ;;  %v614_v39 = vperm.slane %v589_v31, %v596_v61 }
 0x1e2   :  { %v622_v14 = vsel %vm621_vm5, %v612_v33, %v620_v32 }
 0x1e3   :  { %v624_v13 = vsel %vm623_vm6, %v613_v35, %v622_v14 }
 0x1e4   :  { %v626_v41 = vsel %vm625_vm7, %v614_v39, %v624_v13 }
 0x1e8   :  { %v591_v34 = vpop.xlane.xlu0 %590  ;;  %v599_v28 = vpop.permute.xlu2 %598 }
 0x1e9   :  { %v615_v36 = vperm.slane %v591_v34, %v596_v61  ;;  %vm600_vm10 = vcmp.lt.s32.totalorder %v596_v61, %v599_v28 }
 0x1ea   :  { %v932_v52 = vsel %vm600_vm10, 1.0, %v1129_v44 }
 0x1eb   :  { %v628_v43 = vsel %vm627_vm8, %v615_v36, %v626_v41 }
 0x1f0   :  { %v593_v40 = vpop.xlane.xlu1 %592 }
 0x1f1   :  { %v616_v42 = vperm.slane %v593_v40, %v596_v61 }
 0x1f3   :  { %v630_v45 = vsel %vm629_vm9, %v616_v42, %v628_v43 }
 0x1f4   :  { %v632_v46 = vsel %vm600_vm10, %v630_v45, -1e+30 }
 0x1f5   :  { %v634_v8 = vsel %vm633_vm11, %v632_v46, -inf }
 0x1f6   :  { %635 = vmax.xlane.f32.xlu0 %v634_v8 }
 0x269   :  { %v636_v48 = vpop.xlane.xlu0 %635 }
 0x26a   :  { %v637_v49 = vsub.f32 %v632_v46, %v636_v48 }
 0x26c   :  { %v638_v50 = vmul.f32 1.442695, %v637_v49 }
 0x26e   :  { %990 = vpow2.f32 %v638_v50 }
 0x274   :  { %v991_v51 = vpop.eup %990 }
 0x275   :  { %v642_v53 = vmul.f32 %v991_v51, %v932_v52 }
 0x277   :  { %v643_v55 = vsel %vm633_vm11, %v642_v53, 0.0 }
 0x278   :  { %644 = vadd.xlane.f32.xlu1 %v643_v55 }
 0x2eb   :  { %v645_v47 = vpop.xlane.xlu1 %644 }
 0x2ec   :  { %vm646_vm12 = vcmp.gt.f32.partialorder %v645_v47, 0.0 }
 0x2ed   :  { %v647_v56 = vsel %vm646_vm12, %v645_v47, 1.0 }
 0x2ee   :  { %992 = vrcp.f32 %v647_v56  ;;  %v659_v59 = vand.u32 2147483648, %v647_v56  ;;  %v657_v62 = vand.u32 2147483647, %v647_v56  ;;  %vm653_vm14 = vweird.f32 %v647_v56 }
 0x2f0   :  { %v660_v54 = vor.u32 1.1754944e-38, %v659_v59  ;;  %vm658_vm0 = vcmp.eq.f32.partialorder %v657_v62, 8.507059e+37 }
 0x2f4   :  { %v993_v57 = vpop.eup %992 }
 0x2f5   :  { %v649_v58 = vmul.f32 %v993_v57, %v647_v56  ;;  %vm654_vm13 = vweird.f32 %v993_v57 }
 0x2f6   :  { %vm655_vm15 = vmor %vm653_vm14, %vm654_vm13 }
 0x2f7   :  { %v650_v23 = vsub.f32 1.0, %v649_v58 }
 0x2f9   :  { %v651_v60 = vmul.f32 %v993_v57, %v650_v23 }
 0x2fb   :  { %v652_v63 = vadd.f32 %v993_v57, %v651_v60 }
 0x2fd   :  { %v656_v44 = vsel %vm655_vm15, %v993_v57, %v652_v63 }
 0x2fe   :  { %v661_v0 = vsel %vm658_vm0, %v660_v54, %v656_v44 }
 0x2ff   :  { %v662_v1 = vmul.f32 %v661_v0, %v642_v53 }
 0x301   :  { %663 = vst.msk [vmem:[#allocation9] sm:$0xff] %vm633_vm11, %v662_v1  ;;  %v678_v25 = vperm.slane %v662_v1, 2  ;;  %v671_v2 = vperm.slane %v662_v1, 1  ;;  %v664_v3 = vperm.slane %v662_v1, 0  ;;  %v685_v4 = vperm.slane %v662_v1, 3 }
 0x302   :  { %v699_v5 = vperm.slane %v662_v1, 5  ;;  %v692_v6 = vperm.slane %v662_v1, 4  ;;  %v713_v10 = vperm.slane %v662_v1, 7  ;;  %v706_v11 = vperm.slane %v662_v1, 6  ;;  %831 = dma.vmem_to_hbm [thread:$0]  %s827_s26, 128, %s829_s29, [#allocation10]  }
 0x303   :  { %683 = vperm.xlu2 %970, %v678_v25   ;;  %676 = vperm.xlu1 %969, %v671_v2  }
 0x304   :  { %669 = vperm.xlu0 %968, %v664_v3  }
 0x30b   :  { %690 = vperm.xlu2 %970, %v685_v4   ;;  %704 = vperm.xlu1 %969, %v699_v5  }
 0x313   :  { %697 = vperm.xlu2 %970, %v692_v6   ;;  %718 = vperm.xlu1 %969, %v713_v10  }
 0x31b   :  { %711 = vperm.xlu2 %970, %v706_v11  }
 0x35d   :  { %v684_v20 = vpop.permute.xlu2 %683 }
 0x35e   :  { %v722_v18 = vmul.f32 %v684_v20, %v1254_v15 }
 0x360   :  { %v740_v61 = vrot.slane %v722_v18, 4 }
 0x362   :  { %v741_v27 = vadd.f32 %v740_v61, %v722_v18 }
 0x364   :  { %v742_v35 = vrot.slane %v741_v27, 2 }
 0x365   :  { %v691_v12 = vpop.permute.xlu2 %690 }
 0x366   :  { %v723_v24 = vmul.f32 %v691_v12, %v1257_v16  ;;  %v743_v40 = vadd.f32 %v742_v35, %v741_v27 }
 0x368   :  { %v746_v26 = vrot.slane %v723_v24, 4  ;;  %v744_v49 = vrot.slane %v743_v40, 1 }
 0x36a   :  { %v747_v32 = vadd.f32 %v746_v26, %v723_v24  ;;  %v745_v58 = vadd.f32 %v744_v49, %v743_v40 }
 0x36c   :  { %v748_v39 = vrot.slane %v747_v32, 2  ;;  %v778_v2 = vpack.c.bf16 %v745_v58, %v745_v58 }
 0x36d   :  { %v698_v21 = vpop.permute.xlu2 %697 }
 0x36e   :  { %v724_v17 = vmul.f32 %v698_v21, %v1301_v7  ;;  %v794_v21 = vunpack.c.l.b16 %v778_v2 }
 0x370   :  { %v752_v29 = vrot.slane %v724_v17, 4 }
 0x372   :  { %v753_v36 = vadd.f32 %v752_v29, %v724_v17 }
 0x374   :  { %v754_v43 = vrot.slane %v753_v36, 2 }
 0x375   :  { %v712_v30 = vpop.permute.xlu2 %711  ;;  %v677_v31 = vpop.permute.xlu1 %676 }
 0x376   :  { %v726_v33 = vmul.f32 %v712_v30, %v1329_v37  ;;  %v721_v14 = vmul.f32 %v677_v31, %v1316_v22  ;;  %v670_v34 = vpop.permute.xlu0 %669  ;;  %v749_v37 = vadd.f32 %v748_v39, %v747_v32  ;;  %v755_v52 = vadd.f32 %v754_v43, %v753_v36 }
 0x377   :  { %v720_v15 = vmul.f32 %v670_v34, %v1324_v19 }
 0x378   :  { %v734_v13 = vrot.slane %v721_v14, 4  ;;  %v764_v16 = vrot.slane %v726_v33, 4  ;;  %v750_v47 = vrot.slane %v749_v37, 1  ;;  %v756_v62 = vrot.slane %v755_v52, 1 }
 0x379   :  { %v728_v28 = vrot.slane %v720_v15, 4 }
 0x37a   :  { %v735_v7 = vadd.f32 %v734_v13, %v721_v14  ;;  %v765_v45 = vadd.f32 %v764_v16, %v726_v33  ;;  %v751_v0 = vadd.f32 %v750_v47, %v749_v37  ;;  %v757_v6 = vadd.f32 %v756_v62, %v755_v52 }
 0x37b   :  { %v729_v41 = vadd.f32 %v728_v28, %v720_v15 }
 0x37c   :  { %v736_v42 = vrot.slane %v735_v7, 2  ;;  %v766_v53 = vrot.slane %v765_v45, 2  ;;  %v779_v11 = vpack.c.bf16 %v751_v0, %v751_v0  ;;  %v780_v17 = vpack.c.bf16 %v757_v6, %v757_v6 }
 0x37d   :  { %v730_v46 = vrot.slane %v729_v41, 2  ;;  %v705_v8 = vpop.permute.xlu1 %704 }
 0x37e   :  { %v737_v48 = vadd.f32 %v736_v42, %v735_v7  ;;  %v725_v22 = vmul.f32 %v705_v8, %v1304_v9  ;;  %v767_v63 = vadd.f32 %v766_v53, %v765_v45  ;;  %v795_v29 = vunpack.c.l.b16 %v779_v11 }
 0x37f   :  { %v731_v50 = vadd.f32 %v730_v46, %v729_v41  ;;  %v796_v33 = vunpack.c.l.b16 %v780_v17 }
 0x380   :  { %v738_v19 = vrot.slane %v737_v48, 1  ;;  %v758_v51 = vrot.slane %v725_v22, 4  ;;  %v768_v10 = vrot.slane %v767_v63, 1 }
 0x381   :  { %v732_v55 = vrot.slane %v731_v50, 1 }
 0x382   :  { %v739_v56 = vadd.f32 %v738_v19, %v737_v48  ;;  %v759_v57 = vadd.f32 %v758_v51, %v725_v22  ;;  %v769_v26 = vadd.f32 %v768_v10, %v767_v63 }
 0x383   :  { %v733_v23 = vadd.f32 %v732_v55, %v731_v50 }
 0x384   :  { %v777_v59 = vpack.c.bf16 %v739_v56, %v739_v56  ;;  %v760_v60 = vrot.slane %v759_v57, 2  ;;  %v782_v14 = vpack.c.bf16 %v769_v26, %v769_v26 }
 0x385   :  { %v776_v54 = vpack.c.bf16 %v733_v23, %v733_v23  ;;  %v719_v44 = vpop.permute.xlu1 %718 }
 0x386   :  { %v793_v9 = vunpack.c.l.b16 %v777_v59  ;;  %v761_v1 = vadd.f32 %v760_v60, %v759_v57  ;;  %v727_v25 = vmul.f32 %v719_v44, %v1332_v38  ;;  %v798_v36 = vunpack.c.l.b16 %v782_v14 }
 0x387   :  { %v792_v3 = vunpack.c.l.b16 %v776_v54 }
 0x388   :  { %v762_v4 = vrot.slane %v761_v1, 1  ;;  %v770_v5 = vrot.slane %v727_v25, 4 }
 0x389   :  { %v800_v20 = vsel %vm617_vm2, %v793_v9, %v792_v3 }
 0x38a   :  { %v763_v12 = vadd.f32 %v762_v4, %v761_v1  ;;  %v771_v18 = vadd.f32 %v770_v5, %v727_v25  ;;  %v801_v27 = vsel %vm619_vm4, %v794_v21, %v800_v20 }
 0x38b   :  { %v802_v32 = vsel %vm621_vm5, %v795_v29, %v801_v27 }
 0x38c   :  { %v781_v24 = vpack.c.bf16 %v763_v12, %v763_v12  ;;  %v772_v61 = vrot.slane %v771_v18, 2  ;;  %v803_v35 = vsel %vm623_vm6, %v796_v33, %v802_v32 }
 0x38e   :  { %v773_v38 = vadd.f32 %v772_v61, %v771_v18  ;;  %v797_v30 = vunpack.c.l.b16 %v781_v24 }
 0x390   :  { %v774_v31 = vrot.slane %v773_v38, 1  ;;  %v804_v13 = vsel %vm625_vm7, %v797_v30, %v803_v35 }
 0x391   :  { %v805_v28 = vsel %vm627_vm8, %v798_v36, %v804_v13 }
 0x392   :  { %v775_v34 = vadd.f32 %v774_v31, %v773_v38 }
 0x394   :  { %v783_v15 = vpack.c.bf16 %v775_v34, %v775_v34 }
 0x396   :  { %v799_v16 = vunpack.c.l.b16 %v783_v15 }
 0x398   :  { %v806_v39 = vsel %vm629_vm9, %v799_v16, %v805_v28 }
 0x399   :  { %v807_v7 = vpack.c.b16 %v806_v39, %v806_v39 }
 0x39b   :  { %809 = vst [vmem:[#allocation8] sm:$0xf] %v807_v7 }
 0x39c   :  { %820 = dma.vmem_to_hbm [thread:$0]  %s816_s30, 64, %s818_s11, [#allocation4]  }
 0x39d   :  { %1118 = dma.done.wait [#allocation4], 64  }
 0x39e   :  { %1119 = vsyncadd [#allocation4], 4294967232 }
 0x39f   :  { %1120 = dma.done.wait [#allocation10], 128  }
 0x3a0   :  { %1121 = vsyncadd [#allocation10], 4294967168 }
 0x3a1   :  { %840 = vsyncpa [#allocation3], 1 }
 0x3a2   :  { %841 = vsyncpa [#allocation6], 1 }
 0x3a3   :  { %842 = vsyncpa [#allocation4], 1 }
 0x3a4   :  { %843 = vsyncpa [#allocation10], 1 }

</bundles_post_ra>
